<compile_context>
chip_gen: v6e
topology: v6e:2x2x1
jax: 0.10.0
libtpu: 0.0.40
codegen_flags: <defaults>
</compile_context>

<pallas_src>
import functools

import jax
import jax.numpy as jnp
from jax.experimental import pallas as pl
from jax.experimental.pallas import tpu as pltpu


def _round_up(v: int, m: int) -> int:
    return (v + m - 1) // m * m


def _preemphasis_kernel(x_ref, prevblk_ref, o_ref, *, coef: float):
    """One (tb, tk) tile.  prevblk_ref is the (tb, 128) block ending at column t*tk - 1."""
    t = pl.program_id(1)
    x = x_ref[...].astype(jnp.float32)          # compute in f32 (v5e has no bf16 VALU; free, mem-bound)

    # prev[:, k] = x[:, k-1] within the tile via an XLU lane rotation (column 0 wraps;
    # it is replaced below, in-register, before the single full-tile store).
    rolled = pltpu.roll(x, shift=1, axis=1)

    # True predecessor of the tile's first column:
    #   t == 0 : reflect pad  -> x[:, 1]
    #   t  > 0 : x[:, t*tk-1] -> last column of the preceding 128-wide block.
    prev_last = prevblk_ref[...][:, -1:].astype(jnp.float32)
    prev_first = jnp.where(t == 0, x[:, 1:2], prev_last)          # (tb, 1)

    col = jax.lax.broadcasted_iota(jnp.int32, x.shape, dimension=1)
    prev = jnp.where(col == 0, prev_first, rolled)

    o_ref[...] = (x - coef * prev).astype(o_ref.dtype)            # one lane-dense store


def _reference(x: jnp.ndarray, coef: float = 0.97) -> jnp.ndarray:
    # Pure-JAX reference matching F.pad(..., 'reflect') + conv1d([-coef, 1.0]).
    padded = jnp.concatenate([x[:, 1:2], x], axis=1)
    return padded[:, 1:] - coef * padded[:, :-1]


def pre_emphasis(x: jax.Array, coef: float = 0.97,
                 *, target_tile_bytes: int = 4 * 1024 * 1024) -> jax.Array:
    assert x.ndim == 2, "The number of dimensions of inputs tensor must be 2!"
    B, T = x.shape
    assert T >= 2, "PreEmphasis requires T >= 2 (reflect pad reads x[:, 1])."

    if T < 128:
        # Degenerate: shorter than one vreg lane width -- not worth a kernel launch.
        return _reference(x, coef).astype(x.dtype)

    itemsize = jnp.dtype(x.dtype).itemsize

    # Batch tile: the whole batch when it is small (block dim == full array dim is always
    # legal), otherwise 256 rows (a multiple of every sublane packing: 8/16/32) with a
    # partial edge block for the remainder.
    tb = B if B <= 256 else 256

    # Time tile from a per-buffer byte budget; lane width always a multiple of 128 and
    # never larger than T, so ragged tails become partial edge blocks and pltpu.roll
    # always sees a 128-aligned lane width.
    tk_max = max(128, (target_tile_bytes // (tb * itemsize)) // 128 * 128)
    n_t = pl.cdiv(T, tk_max)
    # v7x has two TensorCores; with both grid axes "parallel", >=2 time tiles lets both
    # stream even when there is a single batch block -- but only when tiles stay large
    # enough (>= 512 KiB) that per-grid-step overhead (~0.35 us) stays negligible.
    if n_t == 1 and tb * _round_up(pl.cdiv(T, 2), 128) * itemsize >= 512 * 1024:
        n_t = 2
    tk = min(_round_up(pl.cdiv(T, n_t), 128), (T // 128) * 128)

    bpt = tk // 128                      # 128-wide lane blocks per time tile
    grid = (pl.cdiv(B, tb), pl.cdiv(T, tk))

    kernel = functools.partial(_preemphasis_kernel, coef=float(coef))
    return pl.pallas_call(
        kernel,
        out_shape=jax.ShapeDtypeStruct((B, T), x.dtype),
        grid=grid,
        in_specs=[
            pl.BlockSpec((tb, tk), lambda b, t: (b, t)),
            # The 128-wide block whose last column is x[:, t*tk - 1]; content unused at t == 0.
            pl.BlockSpec((tb, 128), lambda b, t: (b, jnp.maximum(t * bpt - 1, 0))),
        ],
        out_specs=pl.BlockSpec((tb, tk), lambda b, t: (b, t)),
        compiler_params=pltpu.CompilerParams(
            dimension_semantics=("parallel", "parallel"),
            vmem_limit_bytes=32 * 1024 * 1024,
        ),
    )(x, x)


if __name__ == "__main__":
    key = jax.random.PRNGKey(0)
    coef = 0.97
    cases = [
        ((4, 4096), jnp.float32, {}),                               # typical: single time tile
        ((3, 200),  jnp.float32, {}),                               # ragged B & T -> partial edge blocks
        ((8, 1024), jnp.float32, {"target_tile_bytes": 8 * 1024}),  # forced multi-tile: cross-tile prev path
        ((6, 512),  jnp.bfloat16, {}),                              # bf16 in/out, f32 compute
        ((5, 100),  jnp.float32, {}),                               # degenerate T<128 fallback path
    ]
    for (B, T), dtype, kw in cases:
        key, sub = jax.random.split(key)
        x = jax.random.normal(sub, (B, T), dtype=jnp.float32).astype(dtype)

        y = jax.block_until_ready(pre_emphasis(x, coef=coef, **kw))
        y_ref = _reference(x.astype(jnp.float32), coef).astype(dtype)

        assert y.shape == (B, T) and y.dtype == jnp.dtype(dtype), ((B, T), dtype)
        tol = 1e-5 if dtype == jnp.float32 else 2e-2
        assert jnp.allclose(y.astype(jnp.float32), y_ref.astype(jnp.float32),
                            atol=tol, rtol=tol), ((B, T), dtype)

    print("KERNEL_OK")
</pallas_src>

<mosaic_0001>
module attributes {stable_mosaic.version = 11 : i64} {
  func.func @_preemphasis_kernel(%arg0: i32, %arg1: i32, %arg2: memref<4x4096xf32, #tpu.memory_space<vmem>>, %arg3: memref<4x128xf32, #tpu.memory_space<vmem>>, %arg4: memref<4x4096xf32, #tpu.memory_space<vmem>>) attributes {dimension_semantics = [#tpu.dimension_semantics<parallel>, #tpu.dimension_semantics<parallel>], iteration_bounds = array<i64: 1, 1>, scalar_prefetch = 0 : i64, scratch_operands = 0 : i64, tpu.core_type = #tpu.core_type<tc>, window_params = [{transform_indices = @transform_0, window_bounds = array<i64: 4, 4096>}, {transform_indices = @transform_1, window_bounds = array<i64: 4, 128>}, {transform_indices = @transform_2, window_bounds = array<i64: 4, 4096>}]} {
    %c0 = arith.constant 0 : index
    %c0_0 = arith.constant 0 : index
    %0 = vector.load %arg2[%c0, %c0_0] : memref<4x4096xf32, #tpu.memory_space<vmem>>, vector<4x4096xf32>
    %c1_i32 = arith.constant 1 : i32
    %1 = tpu.dynamic_rotate %0 by %c1_i32 dim 1 : vector<4x4096xf32>, i32 -> vector<4x4096xf32>
    %c0_1 = arith.constant 0 : index
    %c0_2 = arith.constant 0 : index
    %2 = vector.load %arg3[%c0_1, %c0_2] : memref<4x128xf32, #tpu.memory_space<vmem>>, vector<4x128xf32>
    %3 = vector.extract_strided_slice %2 {offsets = [0, 127], sizes = [4, 1], strides = [1, 1]} : vector<4x128xf32> to vector<4x1xf32>
    %c0_i32 = arith.constant 0 : i32
    %4 = arith.cmpi eq, %arg1, %c0_i32 : i32
    %5 = vector.extract_strided_slice %0 {offsets = [0, 1], sizes = [4, 1], strides = [1, 1]} : vector<4x4096xf32> to vector<4x1xf32>
    %6 = arith.select %4, %5, %3 : vector<4x1xf32>
    %7 = tpu.iota {dimensions = array<i32: 1>} : vector<4x4096xi32>
    %c0_i32_3 = arith.constant 0 : i32
    %8 = vector.broadcast %c0_i32_3 : i32 to vector<4x4096xi32>
    %9 = arith.cmpi eq, %7, %8 : vector<4x4096xi32>
    %10 = vector.shape_cast %6 : vector<4x1xf32> to vector<4x1xf32>
    %11 = vector.broadcast %10 : vector<4x1xf32> to vector<4x4096xf32>
    %12 = arith.select %9, %11, %1 : vector<4x4096xi1>, vector<4x4096xf32>
    %cst = arith.constant 9.700000e-01 : f32
    %13 = vector.broadcast %cst : f32 to vector<4x4096xf32>
    %14 = arith.mulf %13, %12 : vector<4x4096xf32>
    %15 = arith.subf %0, %14 : vector<4x4096xf32>
    %c0_4 = arith.constant 0 : index
    %c0_5 = arith.constant 0 : index
    %16 = vector.load %arg4[%c0_4, %c0_5] : memref<4x4096xf32, #tpu.memory_space<vmem>>, vector<4x4096xf32>
    tpu.vector_store %arg4[%c0_4, %c0_5], %15 {strides = array<i32>} : memref<4x4096xf32, #tpu.memory_space<vmem>>, vector<4x4096xf32>,
    return
  }
  func.func @transform_0(%arg0: i32, %arg1: i32) -> (i32, i32) {
    %c0_i32 = arith.constant 0 : i32
    return %arg0, %arg1 : i32, i32
  }
  func.func @transform_1(%arg0: i32, %arg1: i32) -> (i32, i32) {
    %c32_i32 = arith.constant 32 : i32
    %0 = arith.muli %arg1, %c32_i32 : i32
    %c1_i32 = arith.constant 1 : i32
    %1 = arith.subi %0, %c1_i32 : i32
    %c0_i32 = arith.constant 0 : i32
    %2 = arith.maxsi %1, %c0_i32 : i32
    %c0_i32_0 = arith.constant 0 : i32
    return %arg0, %2 : i32, i32
  }
  func.func @transform_2(%arg0: i32, %arg1: i32) -> (i32, i32) {
    %c0_i32 = arith.constant 0 : i32
    return %arg0, %arg1 : i32, i32
  }
}

</mosaic_0001>

<bundles_post_ra>
// kernel: tpu_custom_call.1
= control target key start
LH: loop header
LB: loop body
LE: loop exit
PB: predicated region body
PF: predicated region fallthrough
CT: control target
= control target key end

     0   :  { %7 = vsyncpa [#allocation3], 0  ;;  %s795_s0 = inlined_call_operand.hbm [shape: f32[4,4096], index: 0, kind: input, shape index: {}]   ;;  %s796_s1 = inlined_call_operand.hbm [shape: f32[4,4096], index: 1, kind: input, shape index: {}]   ;;  %s797_s2 = inlined_call_operand.hbm [shape: f32[4,4096], index: 2, kind: output, shape index: {}]  }
   0x1   :  { %8 = vsyncpa [#allocation6], 0 }
   0x2   :  { %9 = vsyncpa [#allocation4], 0  ;;  %s564_s9 = smov [#allocation2]   ;;  %s565_s11 = smov [#allocation5]  }
   0x3   :  { %s16_s10 = sshll.u32 %s564_s9, 4  ;;  %s32_s12 = sshll.u32 %s565_s11, 4  ;;  %s17_s10 = int_to_ptr.vmem [resolvable:$true] %s16_s10  ;;  %s33_s12 = int_to_ptr.vmem [resolvable:$true] %s32_s12 }
   0x4   :  { %s506_s13 = scalar_lea.vmem %s17_s10, 2048  ;;  %p511_p1 = scmp.lt.s32.totalorder %s17_s10, %s17_s10 }
   0x5   :  { %p507_p0 = scmp.ne.s32.totalorder %s17_s10, %s506_s13  ;;  %p512_p2 = scmp.lt.s32.totalorder %s506_s13, %s506_s13 }
   0x7   :  { %p513_p3 = por %p512_p2, %p511_p1 }
   0x9   :  { %p514_p4 = pnand %p513_p3, %p507_p0 }
   0xb   :  { %517 = shalt.err (!%p514_p4)
}
   0xc   :  { %19 = dma.hbm_to_vmem [thread:$0]  %s795_s0, 2048, %s17_s10, [#allocation3]  }
   0xd   :  { %s526_s16 = scalar_lea.vmem %s33_s12, 64  ;;  %p531_p6 = scmp.lt.s32.totalorder %s33_s12, %s33_s12 }
   0xe   :  { %p527_p5 = scmp.ne.s32.totalorder %s33_s12, %s526_s16  ;;  %p532_p7 = scmp.lt.s32.totalorder %s526_s16, %s526_s16 }
  0x10   :  { %p533_p8 = por %p532_p7, %p531_p6 }
  0x12   :  { %p534_p9 = pnand %p533_p8, %p527_p5 }
  0x14   :  { %537 = shalt.err (!%p534_p9)
}
  0x15   :  { %35 = dma.hbm_to_vmem [thread:$0]  %s796_s1, 64, %s33_s12, [#allocation6]  }
  0x16   :  { %558 = dma.done.wait [#allocation3], 2048  }
  0x17   :  { %559 = vsyncadd [#allocation3], 4294965248 }
  0x18   :  { %560 = dma.done.wait [#allocation6], 64  }
  0x19   :  { %561 = vsyncadd [#allocation6], 4294967232  ;;  %v566_v0 = vmov 1   ;;  %v591_v1 = vld [vmem:[#allocation2] sm:$0xff]  ;;  %v593_v2 = vld [vmem:[#allocation2 + $0x78] sm:$0xff]  ;;  %s567_s0 = smov 1   ;;  %v174_v33 = vlaneseq }
  0x1a   :  { %481 = vset.pattern.permute.xlu0 %v566_v0  ;;  %v93_v3 = vcombine.high %v593_v2, %v593_v2  ;;  %v78_v4 = vcombine.high %v591_v1, %v591_v1  ;;  %v601_v5 = vld [vmem:[#allocation2 + $0x8] sm:$0xff]  ;;  %v608_v7 = vld [vmem:[#allocation2 + $0x10] sm:$0xff]  ;;  %v615_v9 = vld [vmem:[#allocation2 + $0x18] sm:$0xff]  ;;  %v568_v34 = vmov 839922192   ;;  %s569_s1 = smov [#allocation7]  }
  0x1b   :  { %284 = vperm.xlu0 %481, %v591_v1   ;;  %v79_v6 = vcombine.high %v601_v5, %v601_v5  ;;  %v80_v8 = vcombine.high %v608_v7, %v608_v7  ;;  %v81_v10 = vcombine.high %v615_v9, %v615_v9  ;;  %v622_v11 = vld [vmem:[#allocation2 + $0x20] sm:$0xff]  ;;  %v629_v13 = vld [vmem:[#allocation2 + $0x28] sm:$0xff]  ;;  %v636_v15 = vld [vmem:[#allocation2 + $0x30] sm:$0xff]  ;;  %v288_v35 = vunpack.c.l.s4 %v568_v34  ;;  %s463_s19 = sshll.u32 %s569_s1, 4  ;;  %s464_s19 = int_to_ptr.vmem [resolvable:$true] %s463_s19 }
  0x1c   :  { %172 = vrot.lane.b32.xlu1 %v93_v3, %s567_s0  ;;  %v82_v12 = vcombine.high %v622_v11, %v622_v11  ;;  %v83_v14 = vcombine.high %v629_v13, %v629_v13  ;;  %v84_v16 = vcombine.high %v636_v15, %v636_v15  ;;  %v643_v17 = vld [vmem:[#allocation2 + $0x38] sm:$0xff]  ;;  %v650_v19 = vld [vmem:[#allocation2 + $0x40] sm:$0xff]  ;;  %v657_v21 = vld [vmem:[#allocation2 + $0x48] sm:$0xff]  ;;  %v291_v38 = vshrl.u32 %v174_v33, 7  ;;  %s538_s20 = scalar_lea.vmem %s464_s19, 2048  ;;  %p543_p11 = scmp.lt.s32.totalorder %s464_s19, %s464_s19 }
  0x1d   :  { %v85_v18 = vcombine.high %v643_v17, %v643_v17  ;;  %v86_v20 = vcombine.high %v650_v19, %v650_v19  ;;  %v87_v22 = vcombine.high %v657_v21, %v657_v21  ;;  %v664_v23 = vld [vmem:[#allocation2 + $0x50] sm:$0xff]  ;;  %v671_v25 = vld [vmem:[#allocation2 + $0x58] sm:$0xff]  ;;  %v678_v27 = vld [vmem:[#allocation2 + $0x60] sm:$0xff]  ;;  %v289_v37 = vunpack.c.0.s8 %v288_v35  ;;  %p539_p10 = scmp.ne.s32.totalorder %s464_s19, %s538_s20  ;;  %p544_p12 = scmp.lt.s32.totalorder %s538_s20, %s538_s20 }
  0x1e   :  { %v88_v24 = vcombine.high %v664_v23, %v664_v23  ;;  %v89_v26 = vcombine.high %v671_v25, %v671_v25  ;;  %v90_v28 = vcombine.high %v678_v27, %v678_v27  ;;  %v685_v29 = vld [vmem:[#allocation2 + $0x68] sm:$0xff]  ;;  %v692_v31 = vld [vmem:[#allocation2 + $0x70] sm:$0xff]  ;;  %v706_v40 = vand.u32 127, %v174_v33 }
  0x1f   :  { %110 = vrot.lane.b32.xlu0 %v591_v1, %s567_s0  ;;  %v91_v30 = vcombine.high %v685_v29, %v685_v29  ;;  %v92_v32 = vcombine.high %v692_v31, %v692_v31  ;;  %v292_v41 = vsub.s32 %v289_v37, %v291_v38  ;;  %p545_p13 = por %p544_p12, %p543_p11 }
  0x20   :  { %112 = vrot.lane.b32.xlu1 %v78_v4, %s567_s0  ;;  %vm176_vm0 = vcmp.lt.s32.totalorder %v706_v40, 1  ;;  %vm250_vm1 = vcmp.eq.s32.totalorder %v706_v40, 0 }
  0x21   :  { %p546_p0 = pnand %p545_p13, %p539_p10 }
  0x23   :  { %114 = vrot.lane.b32.xlu0 %v601_v5, %s567_s0 }
  0x24   :  { %116 = vrot.lane.b32.xlu1 %v79_v6, %s567_s0 }
  0x27   :  { %118 = vrot.lane.b32.xlu0 %v608_v7, %s567_s0 }
  0x28   :  { %120 = vrot.lane.b32.xlu1 %v80_v8, %s567_s0 }
  0x2b   :  { %122 = vrot.lane.b32.xlu0 %v615_v9, %s567_s0 }
  0x2c   :  { %124 = vrot.lane.b32.xlu1 %v81_v10, %s567_s0 }
  0x2f   :  { %126 = vrot.lane.b32.xlu0 %v622_v11, %s567_s0 }
  0x30   :  { %128 = vrot.lane.b32.xlu1 %v82_v12, %s567_s0 }
  0x33   :  { %130 = vrot.lane.b32.xlu0 %v629_v13, %s567_s0 }
  0x34   :  { %132 = vrot.lane.b32.xlu1 %v83_v14, %s567_s0 }
  0x37   :  { %134 = vrot.lane.b32.xlu0 %v636_v15, %s567_s0 }
  0x38   :  { %136 = vrot.lane.b32.xlu1 %v84_v16, %s567_s0 }
  0x3b   :  { %138 = vrot.lane.b32.xlu0 %v643_v17, %s567_s0 }
  0x3c   :  { %140 = vrot.lane.b32.xlu1 %v85_v18, %s567_s0 }
  0x3f   :  { %142 = vrot.lane.b32.xlu0 %v650_v19, %s567_s0 }
  0x40   :  { %144 = vrot.lane.b32.xlu1 %v86_v20, %s567_s0 }
  0x43   :  { %146 = vrot.lane.b32.xlu0 %v657_v21, %s567_s0 }
  0x44   :  { %148 = vrot.lane.b32.xlu1 %v87_v22, %s567_s0 }
  0x47   :  { %150 = vrot.lane.b32.xlu0 %v664_v23, %s567_s0 }
  0x48   :  { %152 = vrot.lane.b32.xlu1 %v88_v24, %s567_s0 }
  0x4b   :  { %154 = vrot.lane.b32.xlu0 %v671_v25, %s567_s0 }
  0x4c   :  { %156 = vrot.lane.b32.xlu1 %v89_v26, %s567_s0 }
  0x4f   :  { %158 = vrot.lane.b32.xlu0 %v678_v27, %s567_s0 }
  0x50   :  { %160 = vrot.lane.b32.xlu1 %v90_v28, %s567_s0 }
  0x53   :  { %162 = vrot.lane.b32.xlu0 %v685_v29, %s567_s0 }
  0x54   :  { %164 = vrot.lane.b32.xlu1 %v91_v30, %s567_s0 }
  0x57   :  { %166 = vrot.lane.b32.xlu0 %v692_v31, %s567_s0 }
  0x58   :  { %168 = vrot.lane.b32.xlu1 %v92_v32, %s567_s0 }
  0x5b   :  { %170 = vrot.lane.b32.xlu0 %v593_v2, %s567_s0 }
  0x8e   :  { %v704_v36 = vpop.permute.xlu1 %172 }
  0x92   :  { %v113_v39 = vpop.permute.xlu1 %112 }
  0x96   :  { %v285_v42 = vpop.permute.xlu0 %284  ;;  %v117_v43 = vpop.permute.xlu1 %116 }
  0x97   :  { %v293_v44 = vrot.slane %v285_v42, %v292_v41 }
  0x9a   :  { %v111_v45 = vpop.permute.xlu0 %110  ;;  %v121_v48 = vpop.permute.xlu1 %120 }
  0x9b   :  { %v208_v46 = vsel %vm176_vm0, %v704_v36, %v111_v45  ;;  %v207_v47 = vsel %vm176_vm0, %v111_v45, %v113_v39 }
  0x9c   :  { %v297_v49 = vsel %vm250_vm1, %v293_v44, %v208_v46  ;;  %v330_v50 = vmul.f32 0.97, %v207_v47 }
  0x9d   :  { %v329_v51 = vmul.f32 0.97, %v297_v49 }
  0x9e   :  { %v115_v52 = vpop.permute.xlu0 %114  ;;  %v125_v56 = vpop.permute.xlu1 %124 }
  0x9f   :  { %v393_v53 = vcombine.low %v329_v51, %v330_v50  ;;  %v206_v54 = vsel %vm176_vm0, %v113_v39, %v115_v52  ;;  %v205_v55 = vsel %vm176_vm0, %v115_v52, %v117_v43 }
  0xa0   :  { %v331_v57 = vmul.f32 0.97, %v206_v54  ;;  %v332_v58 = vmul.f32 0.97, %v205_v55 }
  0xa1   :  { %v425_v59 = vsub.f32 %v591_v1, %v393_v53 }
  0xa2   :  { %v394_v60 = vcombine.low %v331_v57, %v332_v58  ;;  %v119_v61 = vpop.permute.xlu0 %118  ;;  %v129_v0 = vpop.permute.xlu1 %128 }
  0xa3   :  { %441 = vst [vmem:[#allocation7] sm:$0xff] %v425_v59  ;;  %v204_v62 = vsel %vm176_vm0, %v117_v43, %v119_v61  ;;  %v203_v63 = vsel %vm176_vm0, %v119_v61, %v121_v48 }
  0xa4   :  { %v426_v3 = vsub.f32 %v601_v5, %v394_v60  ;;  %v333_v4 = vmul.f32 0.97, %v204_v62  ;;  %v334_v6 = vmul.f32 0.97, %v203_v63 }
  0xa6   :  { %442 = vst [vmem:[#allocation7 + $0x8] sm:$0xff] %v426_v3  ;;  %v395_v8 = vcombine.low %v333_v4, %v334_v6  ;;  %v123_v10 = vpop.permute.xlu0 %122  ;;  %v133_v14 = vpop.permute.xlu1 %132 }
  0xa7   :  { %v202_v1 = vsel %vm176_vm0, %v121_v48, %v123_v10  ;;  %v201_v12 = vsel %vm176_vm0, %v123_v10, %v125_v56 }
  0xa8   :  { %v427_v16 = vsub.f32 %v608_v7, %v395_v8  ;;  %v335_v18 = vmul.f32 0.97, %v202_v1  ;;  %v336_v20 = vmul.f32 0.97, %v201_v12 }
  0xaa   :  { %443 = vst [vmem:[#allocation7 + $0x10] sm:$0xff] %v427_v16  ;;  %v396_v22 = vcombine.low %v335_v18, %v336_v20  ;;  %v127_v24 = vpop.permute.xlu0 %126  ;;  %v137_v28 = vpop.permute.xlu1 %136 }
  0xab   :  { %v200_v5 = vsel %vm176_vm0, %v125_v56, %v127_v24  ;;  %v199_v26 = vsel %vm176_vm0, %v127_v24, %v129_v0 }
  0xac   :  { %v428_v30 = vsub.f32 %v615_v9, %v396_v22  ;;  %v337_v32 = vmul.f32 0.97, %v200_v5  ;;  %v338_v33 = vmul.f32 0.97, %v199_v26 }
  0xae   :  { %444 = vst [vmem:[#allocation7 + $0x18] sm:$0xff] %v428_v30  ;;  %v397_v34 = vcombine.low %v337_v32, %v338_v33  ;;  %v131_v35 = vpop.permute.xlu0 %130  ;;  %v141_v38 = vpop.permute.xlu1 %140 }
  0xaf   :  { %v198_v7 = vsel %vm176_vm0, %v129_v0, %v131_v35  ;;  %v197_v37 = vsel %vm176_vm0, %v131_v35, %v133_v14 }
  0xb0   :  { %v429_v39 = vsub.f32 %v622_v11, %v397_v34  ;;  %v339_v41 = vmul.f32 0.97, %v198_v7  ;;  %v340_v42 = vmul.f32 0.97, %v197_v37 }
  0xb2   :  { %445 = vst [vmem:[#allocation7 + $0x20] sm:$0xff] %v429_v39  ;;  %v398_v43 = vcombine.low %v339_v41, %v340_v42  ;;  %v135_v44 = vpop.permute.xlu0 %134  ;;  %v145_v46 = vpop.permute.xlu1 %144 }
  0xb3   :  { %v196_v9 = vsel %vm176_vm0, %v133_v14, %v135_v44  ;;  %v195_v45 = vsel %vm176_vm0, %v135_v44, %v137_v28 }
  0xb4   :  { %v430_v47 = vsub.f32 %v629_v13, %v398_v43  ;;  %v341_v48 = vmul.f32 0.97, %v196_v9  ;;  %v342_v49 = vmul.f32 0.97, %v195_v45 }
  0xb6   :  { %446 = vst [vmem:[#allocation7 + $0x28] sm:$0xff] %v430_v47  ;;  %v399_v50 = vcombine.low %v341_v48, %v342_v49  ;;  %v139_v51 = vpop.permute.xlu0 %138  ;;  %v149_v53 = vpop.permute.xlu1 %148 }
  0xb7   :  { %v194_v11 = vsel %vm176_vm0, %v137_v28, %v139_v51  ;;  %v193_v52 = vsel %vm176_vm0, %v139_v51, %v141_v38 }
  0xb8   :  { %v431_v54 = vsub.f32 %v636_v15, %v399_v50  ;;  %v343_v55 = vmul.f32 0.97, %v194_v11  ;;  %v344_v56 = vmul.f32 0.97, %v193_v52 }
  0xba   :  { %447 = vst [vmem:[#allocation7 + $0x30] sm:$0xff] %v431_v54  ;;  %v400_v57 = vcombine.low %v343_v55, %v344_v56  ;;  %v143_v58 = vpop.permute.xlu0 %142  ;;  %v153_v60 = vpop.permute.xlu1 %152 }
  0xbb   :  { %v192_v13 = vsel %vm176_vm0, %v141_v38, %v143_v58  ;;  %v191_v59 = vsel %vm176_vm0, %v143_v58, %v145_v46 }
  0xbc   :  { %v432_v61 = vsub.f32 %v643_v17, %v400_v57  ;;  %v345_v62 = vmul.f32 0.97, %v192_v13  ;;  %v346_v63 = vmul.f32 0.97, %v191_v59 }
  0xbe   :  { %448 = vst [vmem:[#allocation7 + $0x38] sm:$0xff] %v432_v61  ;;  %v401_v0 = vcombine.low %v345_v62, %v346_v63  ;;  %v147_v3 = vpop.permute.xlu0 %146  ;;  %v157_v6 = vpop.permute.xlu1 %156 }
  0xbf   :  { %v190_v15 = vsel %vm176_vm0, %v145_v46, %v147_v3  ;;  %v189_v4 = vsel %vm176_vm0, %v147_v3, %v149_v53 }
  0xc0   :  { %v433_v8 = vsub.f32 %v650_v19, %v401_v0  ;;  %v347_v10 = vmul.f32 0.97, %v190_v15  ;;  %v348_v1 = vmul.f32 0.97, %v189_v4 }
  0xc2   :  { %449 = vst [vmem:[#allocation7 + $0x40] sm:$0xff] %v433_v8  ;;  %v402_v12 = vcombine.low %v347_v10, %v348_v1  ;;  %v151_v14 = vpop.permute.xlu0 %150  ;;  %v161_v24 = vpop.permute.xlu1 %160 }
  0xc3   :  { %v188_v17 = vsel %vm176_vm0, %v149_v53, %v151_v14  ;;  %v187_v16 = vsel %vm176_vm0, %v151_v14, %v153_v60 }
  0xc4   :  { %v434_v18 = vsub.f32 %v657_v21, %v402_v12  ;;  %v349_v20 = vmul.f32 0.97, %v188_v17  ;;  %v350_v22 = vmul.f32 0.97, %v187_v16 }
  0xc6   :  { %450 = vst [vmem:[#allocation7 + $0x48] sm:$0xff] %v434_v18  ;;  %v403_v5 = vcombine.low %v349_v20, %v350_v22  ;;  %v155_v26 = vpop.permute.xlu0 %154  ;;  %v165_v21 = vpop.permute.xlu1 %164 }
  0xc7   :  { %v186_v19 = vsel %vm176_vm0, %v153_v60, %v155_v26  ;;  %v185_v28 = vsel %vm176_vm0, %v155_v26, %v157_v6 }
  0xc8   :  { %v435_v30 = vsub.f32 %v664_v23, %v403_v5  ;;  %v351_v32 = vmul.f32 0.97, %v186_v19  ;;  %v352_v33 = vmul.f32 0.97, %v185_v28 }
  0xca   :  { %451 = vst [vmem:[#allocation7 + $0x50] sm:$0xff] %v435_v30  ;;  %v404_v34 = vcombine.low %v351_v32, %v352_v33  ;;  %v159_v35 = vpop.permute.xlu0 %158  ;;  %v169_v47 = vpop.permute.xlu1 %168 }
  0xcb   :  { %v184_v7 = vsel %vm176_vm0, %v157_v6, %v159_v35  ;;  %v183_v37 = vsel %vm176_vm0, %v159_v35, %v161_v24 }
  0xcc   :  { %v436_v38 = vsub.f32 %v671_v25, %v404_v34  ;;  %v353_v39 = vmul.f32 0.97, %v184_v7  ;;  %v354_v41 = vmul.f32 0.97, %v183_v37 }
  0xce   :  { %452 = vst [vmem:[#allocation7 + $0x58] sm:$0xff] %v436_v38  ;;  %v405_v42 = vcombine.low %v353_v39, %v354_v41  ;;  %v163_v43 = vpop.permute.xlu0 %162 }
  0xcf   :  { %v182_v23 = vsel %vm176_vm0, %v161_v24, %v163_v43  ;;  %v181_v44 = vsel %vm176_vm0, %v163_v43, %v165_v21 }
  0xd0   :  { %v437_v9 = vsub.f32 %v678_v27, %v405_v42  ;;  %v355_v45 = vmul.f32 0.97, %v182_v23  ;;  %v356_v46 = vmul.f32 0.97, %v181_v44 }
  0xd2   :  { %453 = vst [vmem:[#allocation7 + $0x60] sm:$0xff] %v437_v9  ;;  %v406_v48 = vcombine.low %v355_v45, %v356_v46  ;;  %v167_v49 = vpop.permute.xlu0 %166 }
  0xd3   :  { %v180_v25 = vsel %vm176_vm0, %v165_v21, %v167_v49  ;;  %v179_v50 = vsel %vm176_vm0, %v167_v49, %v169_v47 }
  0xd4   :  { %v438_v51 = vsub.f32 %v685_v29, %v406_v48  ;;  %v357_v11 = vmul.f32 0.97, %v180_v25  ;;  %v358_v52 = vmul.f32 0.97, %v179_v50 }
  0xd6   :  { %454 = vst [vmem:[#allocation7 + $0x68] sm:$0xff] %v438_v51  ;;  %v407_v53 = vcombine.low %v357_v11, %v358_v52  ;;  %v171_v54 = vpop.permute.xlu0 %170 }
  0xd7   :  { %v177_v27 = vsel %vm176_vm0, %v171_v54, %v704_v36  ;;  %v178_v55 = vsel %vm176_vm0, %v169_v47, %v171_v54 }
  0xd8   :  { %v439_v56 = vsub.f32 %v692_v31, %v407_v53  ;;  %v359_v57 = vmul.f32 0.97, %v178_v55  ;;  %v360_v58 = vmul.f32 0.97, %v177_v27 }
  0xda   :  { %455 = vst [vmem:[#allocation7 + $0x70] sm:$0xff] %v439_v56  ;;  %v408_v29 = vcombine.low %v359_v57, %v360_v58 }
  0xdc   :  { %v440_v13 = vsub.f32 %v593_v2, %v408_v29 }
  0xde   :  { %456 = vst [vmem:[#allocation7 + $0x78] sm:$0xff] %v440_v13 }
  0xdf   :  { %549 = shalt.err (!%p546_p0)
}
  0xe0   :  { %466 = dma.vmem_to_hbm [thread:$0]  %s464_s19, 2048, %s797_s2, [#allocation4]  }
  0xe1   :  { %562 = dma.done.wait [#allocation4], 2048  }
  0xe2   :  { %563 = vsyncadd [#allocation4], 4294965248 }
  0xe3   :  { %470 = vsyncpa [#allocation3], 1 }
  0xe4   :  { %471 = vsyncpa [#allocation6], 1 }
  0xe5   :  { %472 = vsyncpa [#allocation4], 1 }

</bundles_post_ra>
